<compile_context>
chip_gen: v5e
topology: v5e:2x2
jax: 0.10.0
libtpu: 0.0.40
codegen_flags: <defaults>
</compile_context>

<pallas_src>
import numpy as np
import jax
import jax.numpy as jnp
from jax.experimental import pallas as pl
from jax.experimental.pallas import tpu as pltpu


def _slow_indices(num_frames: int, alpha: int) -> np.ndarray:
    """Replicates torch.linspace(0, T-1, T//alpha).long() (float32 + trunc)."""
    n = num_frames // alpha
    if n <= 0:
        return np.zeros((0,), dtype=np.int32)
    if n == 1:
        return np.zeros((1,), dtype=np.int32)
    lin = np.linspace(0.0, float(num_frames - 1), n, dtype=np.float32)
    return lin.astype(np.int32)


def _build_gather_kernel(n_slow: int):
    """Kernel: n_slow direct HBM->HBM frame copies driven by SMEM indices."""

    def kernel(idx_ref, frames_hbm, slow_hbm, sems):
        # Issue every frame copy so all DMAs are in flight simultaneously.
        for i in range(n_slow):
            pltpu.make_async_copy(
                frames_hbm.at[:, pl.ds(idx_ref[i], 1), :],
                slow_hbm.at[:, pl.ds(i, 1), :],
                sems.at[i],
            ).start()
        # Then wait for all of them.
        for i in range(n_slow):
            pltpu.make_async_copy(
                frames_hbm.at[:, pl.ds(idx_ref[i], 1), :],
                slow_hbm.at[:, pl.ds(i, 1), :],
                sems.at[i],
            ).wait()

    return kernel


def pack_pathway(frames: jax.Array, alpha: int):
    """frames: (C, T, H, W). Returns [slow_pathway, fast_pathway]."""
    C, T, H, W = frames.shape
    idx_np = _slow_indices(T, alpha)
    n_slow = int(idx_np.shape[0])
    fast = frames  # identity, same as PyTorch (fast_pathway = frames)

    if n_slow == 0:
        # T < alpha: empty index -> empty slow pathway; guard instead of a
        # zero-trip Pallas call.
        return [jnp.zeros((C, 0, H, W), dtype=frames.dtype), fast]

    idx = jnp.asarray(idx_np, dtype=jnp.int32)
    frames_flat = frames.reshape(C, T, H * W)  # free, lane-dense layout

    slow_flat = pl.pallas_call(
        _build_gather_kernel(n_slow),
        out_shape=jax.ShapeDtypeStruct((C, n_slow, H * W), frames.dtype),
        grid_spec=pltpu.PrefetchScalarGridSpec(
            num_scalar_prefetch=1,
            grid=(1,),
            in_specs=[pl.BlockSpec(memory_space=pl.ANY)],   # raw HBM ref
            out_specs=pl.BlockSpec(memory_space=pl.ANY),    # raw HBM ref
            scratch_shapes=[pltpu.SemaphoreType.DMA((n_slow,))],
        ),
        compiler_params=pltpu.CompilerParams(
            dimension_semantics=("arbitrary",),
        ),
    )(idx, frames_flat)

    slow = slow_flat.reshape(C, n_slow, H, W)
    return [slow, fast]


if __name__ == "__main__":
    key = jax.random.PRNGKey(0)
    C, T, H, W = 3, 8, 16, 16
    alpha = 4
    frames = jax.random.normal(key, (C, T, H, W), dtype=jnp.float32)

    slow, fast = pack_pathway(frames, alpha)
    slow = jax.block_until_ready(slow)
    fast = jax.block_until_ready(fast)

    # reference check (pure JAX)
    ref_idx = jnp.asarray(_slow_indices(T, alpha), dtype=jnp.int32)
    slow_ref = jnp.take(frames, ref_idx, axis=1)
    assert slow.shape == (C, T // alpha, H, W)
    assert fast.shape == (C, T, H, W)
    np.testing.assert_allclose(np.asarray(slow), np.asarray(slow_ref))
    np.testing.assert_allclose(np.asarray(fast), np.asarray(frames))

    print("KERNEL_OK")
</pallas_src>

<mosaic_0001>
module attributes {stable_mosaic.version = 11 : i64} {
  func.func @kernel(%arg0: i32, %arg1: memref<2xi32, #tpu.memory_space<smem>>, %arg2: memref<3x8x256xf32, #tpu.memory_space<any>>, %arg3: memref<3x2x256xf32, #tpu.memory_space<any>>, %arg4: memref<2x!tpu.dma_semaphore, #tpu.memory_space<semaphore_mem>>) attributes {dimension_semantics = [#tpu.dimension_semantics<arbitrary>], iteration_bounds = array<i64: 1>, scalar_prefetch = 1 : i64, scratch_operands = 1 : i64, tpu.core_type = #tpu.core_type<tc>, window_params = [{}, {}]} {
    %c0 = arith.constant 0 : index
    %0 = memref.load %arg1[%c0] : memref<2xi32, #tpu.memory_space<smem>>
    %c0_i32 = arith.constant 0 : i32
    %c0_i32_0 = arith.constant 0 : i32
    %c0_i32_1 = arith.constant 0 : i32
    %1 = tpu.memref_slice %arg2[%c0_i32_0, %0, %c0_i32_1] : memref<3x8x256xf32, #tpu.memory_space<any>> -> memref<3x1x256xf32, #tpu.memory_space<any>>
    %c0_i32_2 = arith.constant 0 : i32
    %c0_i32_3 = arith.constant 0 : i32
    %c0_i32_4 = arith.constant 0 : i32
    %2 = tpu.memref_slice %arg3[%c0_i32_2, %c0_i32_3, %c0_i32_4] : memref<3x2x256xf32, #tpu.memory_space<any>> -> memref<3x1x256xf32, #tpu.memory_space<any>>
    %3 = tpu.memref_slice %arg4[%c0_i32] : memref<2x!tpu.dma_semaphore, #tpu.memory_space<semaphore_mem>> -> memref<1x!tpu.dma_semaphore, #tpu.memory_space<semaphore_mem>>
    %4 = tpu.memref_squeeze %3 : memref<1x!tpu.dma_semaphore, #tpu.memory_space<semaphore_mem>> -> memref<!tpu.dma_semaphore, #tpu.memory_space<semaphore_mem>>
    tpu.enqueue_dma source(%1 : memref<3x1x256xf32, #tpu.memory_space<any>>) target(%2 : memref<3x1x256xf32, #tpu.memory_space<any>>) target_semaphore(%4 : memref<!tpu.dma_semaphore, #tpu.memory_space<semaphore_mem>>)
    %c1 = arith.constant 1 : index
    %5 = memref.load %arg1[%c1] : memref<2xi32, #tpu.memory_space<smem>>
    %c1_i32 = arith.constant 1 : i32
    %c0_i32_5 = arith.constant 0 : i32
    %c0_i32_6 = arith.constant 0 : i32
    %6 = tpu.memref_slice %arg2[%c0_i32_5, %5, %c0_i32_6] : memref<3x8x256xf32, #tpu.memory_space<any>> -> memref<3x1x256xf32, #tpu.memory_space<any>>
    %c0_i32_7 = arith.constant 0 : i32
    %c1_i32_8 = arith.constant 1 : i32
    %c0_i32_9 = arith.constant 0 : i32
    %7 = tpu.memref_slice %arg3[%c0_i32_7, %c1_i32_8, %c0_i32_9] : memref<3x2x256xf32, #tpu.memory_space<any>> -> memref<3x1x256xf32, #tpu.memory_space<any>>
    %8 = tpu.memref_slice %arg4[%c1_i32] : memref<2x!tpu.dma_semaphore, #tpu.memory_space<semaphore_mem>> -> memref<1x!tpu.dma_semaphore, #tpu.memory_space<semaphore_mem>>
    %9 = tpu.memref_squeeze %8 : memref<1x!tpu.dma_semaphore, #tpu.memory_space<semaphore_mem>> -> memref<!tpu.dma_semaphore, #tpu.memory_space<semaphore_mem>>
    tpu.enqueue_dma source(%6 : memref<3x1x256xf32, #tpu.memory_space<any>>) target(%7 : memref<3x1x256xf32, #tpu.memory_space<any>>) target_semaphore(%9 : memref<!tpu.dma_semaphore, #tpu.memory_space<semaphore_mem>>)
    %c0_10 = arith.constant 0 : index
    %10 = memref.load %arg1[%c0_10] : memref<2xi32, #tpu.memory_space<smem>>
    %c0_i32_11 = arith.constant 0 : i32
    %c0_i32_12 = arith.constant 0 : i32
    %c0_i32_13 = arith.constant 0 : i32
    %11 = tpu.memref_slice %arg2[%c0_i32_12, %10, %c0_i32_13] : memref<3x8x256xf32, #tpu.memory_space<any>> -> memref<3x1x256xf32, #tpu.memory_space<any>>
    %c0_i32_14 = arith.constant 0 : i32
    %c0_i32_15 = arith.constant 0 : i32
    %c0_i32_16 = arith.constant 0 : i32
    %12 = tpu.memref_slice %arg3[%c0_i32_14, %c0_i32_15, %c0_i32_16] : memref<3x2x256xf32, #tpu.memory_space<any>> -> memref<3x1x256xf32, #tpu.memory_space<any>>
    %13 = tpu.memref_slice %arg4[%c0_i32_11] : memref<2x!tpu.dma_semaphore, #tpu.memory_space<semaphore_mem>> -> memref<1x!tpu.dma_semaphore, #tpu.memory_space<semaphore_mem>>
    %14 = tpu.memref_squeeze %13 : memref<1x!tpu.dma_semaphore, #tpu.memory_space<semaphore_mem>> -> memref<!tpu.dma_semaphore, #tpu.memory_space<semaphore_mem>>
    tpu.wait_dma2 semaphore(%14 : memref<!tpu.dma_semaphore, #tpu.memory_space<semaphore_mem>>) src(%11 : memref<3x1x256xf32, #tpu.memory_space<any>>) dst(%12 : memref<3x1x256xf32, #tpu.memory_space<any>>)
    %c1_17 = arith.constant 1 : index
    %15 = memref.load %arg1[%c1_17] : memref<2xi32, #tpu.memory_space<smem>>
    %c1_i32_18 = arith.constant 1 : i32
    %c0_i32_19 = arith.constant 0 : i32
    %c0_i32_20 = arith.constant 0 : i32
    %16 = tpu.memref_slice %arg2[%c0_i32_19, %15, %c0_i32_20] : memref<3x8x256xf32, #tpu.memory_space<any>> -> memref<3x1x256xf32, #tpu.memory_space<any>>
    %c0_i32_21 = arith.constant 0 : i32
    %c1_i32_22 = arith.constant 1 : i32
    %c0_i32_23 = arith.constant 0 : i32
    %17 = tpu.memref_slice %arg3[%c0_i32_21, %c1_i32_22, %c0_i32_23] : memref<3x2x256xf32, #tpu.memory_space<any>> -> memref<3x1x256xf32, #tpu.memory_space<any>>
    %18 = tpu.memref_slice %arg4[%c1_i32_18] : memref<2x!tpu.dma_semaphore, #tpu.memory_space<semaphore_mem>> -> memref<1x!tpu.dma_semaphore, #tpu.memory_space<semaphore_mem>>
    %19 = tpu.memref_squeeze %18 : memref<1x!tpu.dma_semaphore, #tpu.memory_space<semaphore_mem>> -> memref<!tpu.dma_semaphore, #tpu.memory_space<semaphore_mem>>
    tpu.wait_dma2 semaphore(%19 : memref<!tpu.dma_semaphore, #tpu.memory_space<semaphore_mem>>) src(%16 : memref<3x1x256xf32, #tpu.memory_space<any>>) dst(%17 : memref<3x1x256xf32, #tpu.memory_space<any>>)
    return
  }
}

</mosaic_0001>

<bundles_post_ra>
// kernel: tpu_custom_call.1
= control target key start
LH: loop header
LB: loop body
LE: loop exit
PB: predicated region body
PF: predicated region fallthrough
CT: control target
= control target key end

     0   :  { %s124_s12 = smov [#allocation4]   ;;  %s163_s0 = inlined_call_operand.hbm [shape: s32[2], index: 0, kind: input, shape index: {}]   ;;  %s164_s1 = inlined_call_operand.hbm [shape: f32[3,8,256], index: 1, kind: input, shape index: {}]   ;;  %s165_s2 = inlined_call_operand.hbm [shape: f32[3,2,256], index: 2, kind: output, shape index: {}]  }
   0x1   :  { %s8_s11 = sshll.u32 %s163_s0, 4  ;;  %s9_s11 = int_to_ptr.hbm [resolvable:$true] %s8_s11 }
   0x2   :  { %11 = dma.hbm_to_smem %s9_s11, 16, %s124_s12, [#allocation3] }
   0x3   :  { %118 = dma.done.wait [#allocation3], 16 }
   0x4   :  { %119 = vsyncadd [#allocation3], 4294967280 }
   0x5   :  { %14 = sfence }
   0x6   :  { %s15_s13 = sld [smem:[#allocation4]]  ;;  %s27_s16 = sshll.u32 %s165_s2, 4  ;;  %s28_s16 = int_to_ptr.hbm [resolvable:$true] %s27_s16 }
   0x7   :  { %s125_s17 = smov 128   ;;  %s126_s18 = smov 32  }
   0x8   :  { %32 = sst [smem:[#allocation6]] %s125_s17  ;;  %s127_s19 = smov 1  }
   0x9   :  { %34 = sst [smem:[#allocation6 + $0x1]] %s126_s18  ;;  %s128_s27 = smov [#allocation2]  }
   0xa   :  { %36 = sst [smem:[#allocation6 + $0x2]] %s127_s19  ;;  %s129_s28 = smov [#allocation5]  }
   0xb   :  { %s130_s29 = smov 0   ;;  %s45_s5 = scalar_lea.hbm %s165_s2, 1 }
   0xc   :  { %s16_s20 = sshrl.u32 %s15_s13, 3  ;;  %s17_s0 = sand.u32 7, %s15_s13  }
   0xd   :  { %s92_s21 = sshll.u32 %s16_s20, 4  ;;  %s53_s6 = sshll.u32 %s45_s5, 4  ;;  %s54_s6 = int_to_ptr.hbm [resolvable:$true] %s53_s6 }
   0xe   :  { %s19_s22 = sadd.s32 %s92_s21, %s17_s0  ;;  %s131_s15 = smov [#allocation2 + $0x1]  }
   0xf   :  { %s20_s25 = scalar_lea.hbm %s164_s1, %s19_s22 }
  0x10   :  { %s25_s26 = sshll.u32 %s20_s25, 4  ;;  %s26_s26 = int_to_ptr.hbm [resolvable:$true] %s25_s26 }
  0x11   :  { %38 = dma.general %s26_s26, 96, %s28_s16, %s128_s27, %s129_s28, [#allocation6], %s130_s29, 0  }
  0x12   :  { %s93_s30 = sld [smem:[#allocation4 + $0x1]]  ;;  %s132_s16 = smov [#allocation7]  }
  0x13   :  { %58 = sst [smem:[#allocation8]] %s125_s17 }
  0x14   :  { %60 = sst [smem:[#allocation8 + $0x1]] %s126_s18 }
  0x15   :  { %62 = sst [smem:[#allocation8 + $0x2]] %s127_s19 }
  0x18   :  { %s40_s7 = sshrl.u32 %s93_s30, 3  ;;  %s41_s8 = sand.u32 7, %s93_s30  }
  0x19   :  { %s94_s9 = sshll.u32 %s40_s7, 4 }
  0x1a   :  { %s43_s10 = sadd.s32 %s94_s9, %s41_s8 }
  0x1b   :  { %s44_s13 = scalar_lea.hbm %s164_s1, %s43_s10 }
  0x1c   :  { %s51_s14 = sshll.u32 %s44_s13, 4  ;;  %s52_s14 = int_to_ptr.hbm [resolvable:$true] %s51_s14 }
  0x1d   :  { %64 = dma.general %s52_s14, 96, %s54_s6, %s131_s15, %s132_s16, [#allocation8], %s130_s29, 0  }
  0x1e   :  { %120 = dma.done.wait [#allocation2], 96 }
  0x1f   :  { %121 = vsyncadd [#allocation2], 4294967200 }
  0x20   :  { %122 = dma.done.wait [#allocation2 + $0x1], 96 }
  0x21   :  { %123 = vsyncadd [#allocation2 + $0x1], 4294967200 }
  0x22   :  { %73 = vsyncmov [#allocation2] }
  0x25   :  { %s74_s2 = vpop.sfrf %73 }
  0x26   :  { %p95_p0 = scmp.ne.s32.totalorder %s74_s2, 0 }
  0x28   :  { %78 = shalt.err (%p95_p0)  }
  0x29   :  { %80 = vsyncmov [#allocation2 + $0x1] }
  0x2c   :  { %s81_s17 = vpop.sfrf %80 }
  0x2d   :  { %p96_p1 = scmp.ne.s32.totalorder %s81_s17, 0 }
  0x2f   :  { %85 = shalt.err (%p96_p1)  }

</bundles_post_ra>
